<compile_context>
chip_gen: v6e
topology: v6e:2x2x1
jax: 0.10.0
libtpu: 0.0.40
codegen_flags: <defaults>
</compile_context>

<pallas_src>
import functools
import math

import jax
import jax.numpy as jnp
from jax import lax
from jax.experimental import pallas as pl
from jax.experimental.pallas import tpu as pltpu


def _conv2d_layer_kernel(*refs, c_in, k, padding, h_img, w_img, w_pad, h_out, w_out,
                         block_n, use_bias, use_inorm, activation, act_gain, clamp, eps):
    # refs: x_ref (block_n, c_in, h_img*w_img), w_ref (c_out, k*k*c_in_pad),
    #       [b_ref (c_out, 1) f32], y_ref (block_n, c_out, h_out*w_out),
    #       pad_ref (c_in_pad, l_in), acc_ref (c_out, l_out), pack_ref (c_out, l_pack).
    it = iter(refs)
    x_ref = next(it)
    w_ref = next(it)
    b_ref = next(it) if use_bias else None
    y_ref = next(it)
    pad_ref = next(it)
    acc_ref = next(it)
    pack_ref = next(it)

    c_in_pad = pad_ref.shape[0]
    l_out = h_out * w_pad          # conv output lanes, padded width (shift-trick layout)
    l_pack = h_out * w_out         # packed (valid) output lanes
    kk_cin = k * c_in_pad

    # Zero halo + channel-padding + extra bottom row.  Re-zeroed every grid step so the
    # grid axis is safely "parallel" (no cross-step scratch state); interior is
    # overwritten per image below.  VMEM-only, trivial cost.
    pad_ref[...] = jnp.zeros(pad_ref.shape, dtype=pad_ref.dtype)

    for b in range(block_n):
        # ---- in-kernel zero padding: place image rows into the halo'd flat plane ----
        for hh in range(h_img):
            row = x_ref[b, :, pl.ds(hh * w_img, w_img)]               # (c_in, w_img)
            off = (hh + padding) * w_pad + padding
            pad_ref[pl.ds(0, c_in), pl.ds(off, w_img)] = row

        # ---- conv = K accumulating MXU matmuls of depth K*C_in_pad (f32 acc) ----
        acc = None
        for ky in range(k):
            cols = [pad_ref[:, pl.ds(ky * w_pad + kx, l_out)] for kx in range(k)]
            rhs = cols[0] if k == 1 else jnp.concatenate(cols, axis=0)  # (k*c_in_pad, l_out)
            wk = w_ref[:, pl.ds(ky * kk_cin, kk_cin)]                   # (c_out, k*c_in_pad)
            part = jnp.dot(wk, rhs, preferred_element_type=jnp.float32)
            acc = part if acc is None else acc + part

        # ---- drop padded lane columns -> packed (c_out, h_out*w_out), still f32 ----
        if w_pad == w_out:
            y = acc
        else:
            acc_ref[...] = acc
            for hh in range(h_out):
                pack_ref[:, pl.ds(hh * w_out, w_out)] = acc_ref[:, pl.ds(hh * w_pad, w_out)]
            y = pack_ref[...]

        # ---- bias / activation / gain / clamp / instance norm (all f32) ----
        if use_bias:
            y = y + b_ref[...]                                          # (c_out,1) broadcast
        if activation == "lrelu":
            y = jnp.where(y >= 0, y, jnp.float32(0.2) * y)
        if act_gain != 1.0:
            y = y * jnp.float32(act_gain)
        if clamp is not None:
            y = jnp.clip(y, -jnp.float32(clamp), jnp.float32(clamp))
        if use_inorm:
            # Stats over valid pixels only (they are exactly the packed lanes);
            # one pass: sum(x), sum(x*x); unbiased variance (ddof=1) matching torch.std.
            npix = float(l_pack)
            s1 = jnp.sum(y, axis=1, keepdims=True)
            s2 = jnp.sum(y * y, axis=1, keepdims=True)
            mean = s1 * (1.0 / npix)
            var = jnp.maximum((s2 - s1 * mean) * (1.0 / (npix - 1.0)), 0.0)
            y = (y - mean) / (jnp.sqrt(var) + jnp.float32(eps))

        y_ref[b] = y.astype(y_ref.dtype)


def conv2d_layer(x, weight, bias=None, *, activation="linear", gain=1.0,
                 conv_clamp=None, instance_norm=False, lr_multiplier=1.0,
                 up=1, down=1):
    """Forward of Conv2dLayer (up == down == 1 path).

    x: (N, C_in, H, W); weight: (C_out, C_in, K, K); bias: (C_out,) or None.
    """
    assert x.ndim == 4, f"Wrong shape: {x.shape}"
    # TODO(synk): up/down resampling (upfirdn2d with resample_filter) is not implemented.
    assert up == 1 and down == 1, "resampling not supported in this kernel"
    n, c_in, h, w = x.shape
    c_out, c_in_w, kh, kw = weight.shape
    assert c_in_w == c_in and kh == kw
    k = kh
    assert activation in ("linear", "lrelu")

    padding = k // 2
    weight_gain = 1.0 / math.sqrt(c_in * (k ** 2))
    def_gain = math.sqrt(2.0) if activation == "lrelu" else 1.0
    act_gain = def_gain * gain
    act_clamp = conv_clamp * gain if conv_clamp is not None else None

    h_pad, w_pad = h + 2 * padding, w + 2 * padding
    h_out, w_out = h_pad - k + 1, w_pad - k + 1
    extra = 1 if k > 1 else 0                    # one spare bottom row keeps tap slices in-bounds
    l_in = (h_pad + extra) * w_pad
    l_out = h_out * w_pad
    l_pack = h_out * w_out

    c_in_pad = ((c_in + 7) // 8) * 8             # sublane-align the contraction channels

    # ---- one-time glue on the tiny weight/bias only (x is never touched by XLA) ----
    # Fold equalized-LR gain + lr_multiplier in f32, pad channels, lay out (C_out, ky, kx, ci_pad).
    w2 = weight.astype(jnp.float32) * (weight_gain * lr_multiplier)
    w2 = jnp.transpose(w2, (0, 2, 3, 1))
    if c_in_pad != c_in:
        w2 = jnp.pad(w2, ((0, 0), (0, 0), (0, 0), (0, c_in_pad - c_in)))
    w2 = w2.reshape(c_out, k * k * c_in_pad).astype(x.dtype)

    # Contiguous (free) reshape: (N, C_in, H, W) -> (N, C_in, H*W) so in-kernel row slices
    # are plain lane slices (no cross-dim relayout).
    x_flat = x.reshape(n, c_in, h * w)

    # Several images per grid step (amortize ~0.35us/step), but keep >= 2 parallel steps
    # so both v7x TensorCores get work.
    block_n = 1
    for cand in (4, 2):
        if n % cand == 0 and n // cand >= 2:
            block_n = cand
            break
    grid = (n // block_n,)

    use_bias = bias is not None
    inputs = [x_flat, w2]
    in_specs = [
        pl.BlockSpec((block_n, c_in, h * w), lambda i: (i, 0, 0)),
        pl.BlockSpec((c_out, k * k * c_in_pad), lambda i: (0, 0)),
    ]
    if use_bias:
        b2 = (bias.astype(jnp.float32) * lr_multiplier).reshape(c_out, 1)
        inputs.append(b2)
        in_specs.append(pl.BlockSpec((c_out, 1), lambda i: (0, 0)))

    kernel = functools.partial(
        _conv2d_layer_kernel,
        c_in=c_in, k=k, padding=padding, h_img=h, w_img=w, w_pad=w_pad,
        h_out=h_out, w_out=w_out, block_n=block_n,
        use_bias=use_bias, use_inorm=instance_norm, activation=activation,
        act_gain=act_gain, clamp=act_clamp, eps=1e-8)

    y_flat = pl.pallas_call(
        kernel,
        out_shape=jax.ShapeDtypeStruct((n, c_out, l_pack), x.dtype),
        grid_spec=pltpu.PrefetchScalarGridSpec(
            num_scalar_prefetch=0,
            grid=grid,
            in_specs=in_specs,
            out_specs=pl.BlockSpec((block_n, c_out, l_pack), lambda i: (i, 0, 0)),
            scratch_shapes=[
                pltpu.VMEM((c_in_pad, l_in), x.dtype),      # zero-padded input plane
                pltpu.VMEM((c_out, l_out), jnp.float32),    # conv accumulator (padded width)
                pltpu.VMEM((c_out, l_pack), jnp.float32),   # packed valid columns
            ]),
        compiler_params=pltpu.CompilerParams(
            dimension_semantics=("parallel",)),
    )(*inputs)

    # Contiguous reshape only (no crop / no copy).
    return y_flat.reshape(n, c_out, h_out, w_out)


def _reference(x, weight, bias, *, activation, gain, conv_clamp, instance_norm,
               lr_multiplier):
    c_out, c_in, k, _ = weight.shape
    weight_gain = 1.0 / math.sqrt(c_in * k * k)
    wscaled = (weight * (weight_gain * lr_multiplier)).astype(x.dtype)
    p = k // 2
    y = lax.conv_general_dilated(
        x, wscaled, window_strides=(1, 1), padding=[(p, p), (p, p)],
        dimension_numbers=("NCHW", "OIHW", "NCHW"))
    if bias is not None:
        y = y + (bias * lr_multiplier).reshape(1, c_out, 1, 1).astype(y.dtype)
    def_gain = math.sqrt(2.0) if activation == "lrelu" else 1.0
    if activation == "lrelu":
        y = jnp.where(y >= 0, y, 0.2 * y)
    act_gain = def_gain * gain
    if act_gain != 1.0:
        y = y * act_gain
    if conv_clamp is not None:
        c = conv_clamp * gain
        y = jnp.clip(y, -c, c)
    if instance_norm:
        mean = jnp.mean(y, axis=(2, 3), keepdims=True)
        std = jnp.std(y, axis=(2, 3), keepdims=True, ddof=1)
        y = (y - mean) / (std + 1e-8)
    return y


if __name__ == "__main__":
    in_channels, out_channels, kernel_size = 4, 8, 3
    batch, height, width = 2, 16, 16
    lr_multiplier = 1.0

    key = jax.random.PRNGKey(0)
    kx, kw, kb = jax.random.split(key, 3)
    x = jax.random.normal(kx, (batch, in_channels, height, width), dtype=jnp.float32)
    weight = jax.random.normal(
        kw, (out_channels, in_channels, kernel_size, kernel_size), dtype=jnp.float32)
    bias = 0.1 * jax.random.normal(kb, (out_channels,), dtype=jnp.float32)

    configs = [
        dict(bias=bias, activation="lrelu", gain=1.0, conv_clamp=None,
             instance_norm=False, lr_multiplier=lr_multiplier),
        dict(bias=bias, activation="lrelu", gain=1.0, conv_clamp=0.5,
             instance_norm=True, lr_multiplier=lr_multiplier),
        dict(bias=None, activation="linear", gain=1.0, conv_clamp=None,
             instance_norm=False, lr_multiplier=lr_multiplier),
    ]

    for cfg in configs:
        b = cfg.pop("bias")
        y = conv2d_layer(x, weight, b, **cfg)
        y = jax.block_until_ready(y)
        y_ref = _reference(x, weight, b, **cfg)
        assert y.shape == y_ref.shape, (y.shape, y_ref.shape)
        err = float(jnp.max(jnp.abs(y - y_ref)))
        assert jnp.allclose(y, y_ref, atol=1e-4, rtol=1e-4), (cfg, err)

    print("KERNEL_OK")
</pallas_src>

<mosaic_0001>
module attributes {stable_mosaic.version = 11 : i64} {
  func.func @_conv2d_layer_kernel(%arg0: i32, %arg1: memref<1x4x256xf32, #tpu.memory_space<vmem>>, %arg2: memref<8x72xf32, #tpu.memory_space<vmem>>, %arg3: memref<8x1xf32, #tpu.memory_space<vmem>>, %arg4: memref<1x8x256xf32, #tpu.memory_space<vmem>>, %arg5: memref<8x342xf32, #tpu.memory_space<vmem>>, %arg6: memref<8x288xf32, #tpu.memory_space<vmem>>, %arg7: memref<8x256xf32, #tpu.memory_space<vmem>>) attributes {dimension_semantics = [#tpu.dimension_semantics<parallel>], iteration_bounds = array<i64: 2>, scalar_prefetch = 0 : i64, scratch_operands = 3 : i64, tpu.core_type = #tpu.core_type<tc>, window_params = [{transform_indices = @transform_0, window_bounds = array<i64: 1, 4, 256>}, {pipeline_mode = #tpu.pipeline_mode<synchronous>, transform_indices = @transform_1, window_bounds = array<i64: 8, 72>}, {pipeline_mode = #tpu.pipeline_mode<synchronous>, transform_indices = @transform_2, window_bounds = array<i64: 8, 1>}, {transform_indices = @transform_3, window_bounds = array<i64: 1, 8, 256>}]} {
    %cst = arith.constant 0.000000e+00 : f32
    %0 = vector.broadcast %cst : f32 to vector<8x342xf32>
    %c0 = arith.constant 0 : index
    %c0_0 = arith.constant 0 : index
    %1 = vector.load %arg5[%c0, %c0_0] : memref<8x342xf32, #tpu.memory_space<vmem>>, vector<8x342xf32>
    tpu.vector_store %arg5[%c0, %c0_0], %0 {strides = array<i32>} : memref<8x342xf32, #tpu.memory_space<vmem>>, vector<8x342xf32>,
    %c0_1 = arith.constant 0 : index
    %c0_2 = arith.constant 0 : index
    %c0_3 = arith.constant 0 : index
    %2 = vector.load %arg1[%c0_1, %c0_2, %c0_3] : memref<1x4x256xf32, #tpu.memory_space<vmem>>, vector<1x4x16xf32>
    %3 = vector.shape_cast %2 : vector<1x4x16xf32> to vector<4x16xf32>
    %c0_4 = arith.constant 0 : index
    %c19 = arith.constant 19 : index
    %4 = vector.load %arg5[%c0_4, %c19] : memref<8x342xf32, #tpu.memory_space<vmem>>, vector<4x16xf32>
    tpu.vector_store %arg5[%c0_4, %c19], %3 {strides = array<i32>} : memref<8x342xf32, #tpu.memory_space<vmem>>, vector<4x16xf32>,
    %c0_5 = arith.constant 0 : index
    %c0_6 = arith.constant 0 : index
    %c16 = arith.constant 16 : index
    %5 = vector.load %arg1[%c0_5, %c0_6, %c16] : memref<1x4x256xf32, #tpu.memory_space<vmem>>, vector<1x4x16xf32>
    %6 = vector.shape_cast %5 : vector<1x4x16xf32> to vector<4x16xf32>
    %c0_7 = arith.constant 0 : index
    %c37 = arith.constant 37 : index
    %7 = vector.load %arg5[%c0_7, %c37] : memref<8x342xf32, #tpu.memory_space<vmem>>, vector<4x16xf32>
    tpu.vector_store %arg5[%c0_7, %c37], %6 {strides = array<i32>} : memref<8x342xf32, #tpu.memory_space<vmem>>, vector<4x16xf32>,
    %c0_8 = arith.constant 0 : index
    %c0_9 = arith.constant 0 : index
    %c32 = arith.constant 32 : index
    %8 = vector.load %arg1[%c0_8, %c0_9, %c32] : memref<1x4x256xf32, #tpu.memory_space<vmem>>, vector<1x4x16xf32>
    %9 = vector.shape_cast %8 : vector<1x4x16xf32> to vector<4x16xf32>
    %c0_10 = arith.constant 0 : index
    %c55 = arith.constant 55 : index
    %10 = vector.load %arg5[%c0_10, %c55] : memref<8x342xf32, #tpu.memory_space<vmem>>, vector<4x16xf32>
    tpu.vector_store %arg5[%c0_10, %c55], %9 {strides = array<i32>} : memref<8x342xf32, #tpu.memory_space<vmem>>, vector<4x16xf32>,
    %c0_11 = arith.constant 0 : index
    %c0_12 = arith.constant 0 : index
    %c48 = arith.constant 48 : index
    %11 = vector.load %arg1[%c0_11, %c0_12, %c48] : memref<1x4x256xf32, #tpu.memory_space<vmem>>, vector<1x4x16xf32>
    %12 = vector.shape_cast %11 : vector<1x4x16xf32> to vector<4x16xf32>
    %c0_13 = arith.constant 0 : index
    %c73 = arith.constant 73 : index
    %13 = vector.load %arg5[%c0_13, %c73] : memref<8x342xf32, #tpu.memory_space<vmem>>, vector<4x16xf32>
    tpu.vector_store %arg5[%c0_13, %c73], %12 {strides = array<i32>} : memref<8x342xf32, #tpu.memory_space<vmem>>, vector<4x16xf32>,
    %c0_14 = arith.constant 0 : index
    %c0_15 = arith.constant 0 : index
    %c64 = arith.constant 64 : index
    %14 = vector.load %arg1[%c0_14, %c0_15, %c64] : memref<1x4x256xf32, #tpu.memory_space<vmem>>, vector<1x4x16xf32>
    %15 = vector.shape_cast %14 : vector<1x4x16xf32> to vector<4x16xf32>
    %c0_16 = arith.constant 0 : index
    %c91 = arith.constant 91 : index
    %16 = vector.load %arg5[%c0_16, %c91] : memref<8x342xf32, #tpu.memory_space<vmem>>, vector<4x16xf32>
    tpu.vector_store %arg5[%c0_16, %c91], %15 {strides = array<i32>} : memref<8x342xf32, #tpu.memory_space<vmem>>, vector<4x16xf32>,
    %c0_17 = arith.constant 0 : index
    %c0_18 = arith.constant 0 : index
    %c80 = arith.constant 80 : index
    %17 = vector.load %arg1[%c0_17, %c0_18, %c80] : memref<1x4x256xf32, #tpu.memory_space<vmem>>, vector<1x4x16xf32>
    %18 = vector.shape_cast %17 : vector<1x4x16xf32> to vector<4x16xf32>
    %c0_19 = arith.constant 0 : index
    %c109 = arith.constant 109 : index
    %19 = vector.load %arg5[%c0_19, %c109] : memref<8x342xf32, #tpu.memory_space<vmem>>, vector<4x16xf32>
    tpu.vector_store %arg5[%c0_19, %c109], %18 {strides = array<i32>} : memref<8x342xf32, #tpu.memory_space<vmem>>, vector<4x16xf32>,
    %c0_20 = arith.constant 0 : index
    %c0_21 = arith.constant 0 : index
    %c96 = arith.constant 96 : index
    %20 = vector.load %arg1[%c0_20, %c0_21, %c96] : memref<1x4x256xf32, #tpu.memory_space<vmem>>, vector<1x4x16xf32>
    %21 = vector.shape_cast %20 : vector<1x4x16xf32> to vector<4x16xf32>
    %c0_22 = arith.constant 0 : index
    %c127 = arith.constant 127 : index
    %22 = vector.load %arg5[%c0_22, %c127] : memref<8x342xf32, #tpu.memory_space<vmem>>, vector<4x16xf32>
    tpu.vector_store %arg5[%c0_22, %c127], %21 {strides = array<i32>} : memref<8x342xf32, #tpu.memory_space<vmem>>, vector<4x16xf32>,
    %c0_23 = arith.constant 0 : index
    %c0_24 = arith.constant 0 : index
    %c112 = arith.constant 112 : index
    %23 = vector.load %arg1[%c0_23, %c0_24, %c112] : memref<1x4x256xf32, #tpu.memory_space<vmem>>, vector<1x4x16xf32>
    %24 = vector.shape_cast %23 : vector<1x4x16xf32> to vector<4x16xf32>
    %c0_25 = arith.constant 0 : index
    %c145 = arith.constant 145 : index
    %25 = vector.load %arg5[%c0_25, %c145] : memref<8x342xf32, #tpu.memory_space<vmem>>, vector<4x16xf32>
    tpu.vector_store %arg5[%c0_25, %c145], %24 {strides = array<i32>} : memref<8x342xf32, #tpu.memory_space<vmem>>, vector<4x16xf32>,
    %c0_26 = arith.constant 0 : index
    %c0_27 = arith.constant 0 : index
    %c128 = arith.constant 128 : index
    %26 = vector.load %arg1[%c0_26, %c0_27, %c128] : memref<1x4x256xf32, #tpu.memory_space<vmem>>, vector<1x4x16xf32>
    %27 = vector.shape_cast %26 : vector<1x4x16xf32> to vector<4x16xf32>
    %c0_28 = arith.constant 0 : index
    %c163 = arith.constant 163 : index
    %28 = vector.load %arg5[%c0_28, %c163] : memref<8x342xf32, #tpu.memory_space<vmem>>, vector<4x16xf32>
    tpu.vector_store %arg5[%c0_28, %c163], %27 {strides = array<i32>} : memref<8x342xf32, #tpu.memory_space<vmem>>, vector<4x16xf32>,
    %c0_29 = arith.constant 0 : index
    %c0_30 = arith.constant 0 : index
    %c144 = arith.constant 144 : index
    %29 = vector.load %arg1[%c0_29, %c0_30, %c144] : memref<1x4x256xf32, #tpu.memory_space<vmem>>, vector<1x4x16xf32>
    %30 = vector.shape_cast %29 : vector<1x4x16xf32> to vector<4x16xf32>
    %c0_31 = arith.constant 0 : index
    %c181 = arith.constant 181 : index
    %31 = vector.load %arg5[%c0_31, %c181] : memref<8x342xf32, #tpu.memory_space<vmem>>, vector<4x16xf32>
    tpu.vector_store %arg5[%c0_31, %c181], %30 {strides = array<i32>} : memref<8x342xf32, #tpu.memory_space<vmem>>, vector<4x16xf32>,
    %c0_32 = arith.constant 0 : index
    %c0_33 = arith.constant 0 : index
    %c160 = arith.constant 160 : index
    %32 = vector.load %arg1[%c0_32, %c0_33, %c160] : memref<1x4x256xf32, #tpu.memory_space<vmem>>, vector<1x4x16xf32>
    %33 = vector.shape_cast %32 : vector<1x4x16xf32> to vector<4x16xf32>
    %c0_34 = arith.constant 0 : index
    %c199 = arith.constant 199 : index
    %34 = vector.load %arg5[%c0_34, %c199] : memref<8x342xf32, #tpu.memory_space<vmem>>, vector<4x16xf32>
    tpu.vector_store %arg5[%c0_34, %c199], %33 {strides = array<i32>} : memref<8x342xf32, #tpu.memory_space<vmem>>, vector<4x16xf32>,
    %c0_35 = arith.constant 0 : index
    %c0_36 = arith.constant 0 : index
    %c176 = arith.constant 176 : index
    %35 = vector.load %arg1[%c0_35, %c0_36, %c176] : memref<1x4x256xf32, #tpu.memory_space<vmem>>, vector<1x4x16xf32>
    %36 = vector.shape_cast %35 : vector<1x4x16xf32> to vector<4x16xf32>
    %c0_37 = arith.constant 0 : index
    %c217 = arith.constant 217 : index
    %37 = vector.load %arg5[%c0_37, %c217] : memref<8x342xf32, #tpu.memory_space<vmem>>, vector<4x16xf32>
    tpu.vector_store %arg5[%c0_37, %c217], %36 {strides = array<i32>} : memref<8x342xf32, #tpu.memory_space<vmem>>, vector<4x16xf32>,
    %c0_38 = arith.constant 0 : index
    %c0_39 = arith.constant 0 : index
    %c192 = arith.constant 192 : index
    %38 = vector.load %arg1[%c0_38, %c0_39, %c192] : memref<1x4x256xf32, #tpu.memory_space<vmem>>, vector<1x4x16xf32>
    %39 = vector.shape_cast %38 : vector<1x4x16xf32> to vector<4x16xf32>
    %c0_40 = arith.constant 0 : index
    %c235 = arith.constant 235 : index
    %40 = vector.load %arg5[%c0_40, %c235] : memref<8x342xf32, #tpu.memory_space<vmem>>, vector<4x16xf32>
    tpu.vector_store %arg5[%c0_40, %c235], %39 {strides = array<i32>} : memref<8x342xf32, #tpu.memory_space<vmem>>, vector<4x16xf32>,
    %c0_41 = arith.constant 0 : index
    %c0_42 = arith.constant 0 : index
    %c208 = arith.constant 208 : index
    %41 = vector.load %arg1[%c0_41, %c0_42, %c208] : memref<1x4x256xf32, #tpu.memory_space<vmem>>, vector<1x4x16xf32>
    %42 = vector.shape_cast %41 : vector<1x4x16xf32> to vector<4x16xf32>
    %c0_43 = arith.constant 0 : index
    %c253 = arith.constant 253 : index
    %43 = vector.load %arg5[%c0_43, %c253] : memref<8x342xf32, #tpu.memory_space<vmem>>, vector<4x16xf32>
    tpu.vector_store %arg5[%c0_43, %c253], %42 {strides = array<i32>} : memref<8x342xf32, #tpu.memory_space<vmem>>, vector<4x16xf32>,
    %c0_44 = arith.constant 0 : index
    %c0_45 = arith.constant 0 : index
    %c224 = arith.constant 224 : index
    %44 = vector.load %arg1[%c0_44, %c0_45, %c224] : memref<1x4x256xf32, #tpu.memory_space<vmem>>, vector<1x4x16xf32>
    %45 = vector.shape_cast %44 : vector<1x4x16xf32> to vector<4x16xf32>
    %c0_46 = arith.constant 0 : index
    %c271 = arith.constant 271 : index
    %46 = vector.load %arg5[%c0_46, %c271] : memref<8x342xf32, #tpu.memory_space<vmem>>, vector<4x16xf32>
    tpu.vector_store %arg5[%c0_46, %c271], %45 {strides = array<i32>} : memref<8x342xf32, #tpu.memory_space<vmem>>, vector<4x16xf32>,
    %c0_47 = arith.constant 0 : index
    %c0_48 = arith.constant 0 : index
    %c240 = arith.constant 240 : index
    %47 = vector.load %arg1[%c0_47, %c0_48, %c240] : memref<1x4x256xf32, #tpu.memory_space<vmem>>, vector<1x4x16xf32>
    %48 = vector.shape_cast %47 : vector<1x4x16xf32> to vector<4x16xf32>
    %c0_49 = arith.constant 0 : index
    %c289 = arith.constant 289 : index
    %49 = vector.load %arg5[%c0_49, %c289] : memref<8x342xf32, #tpu.memory_space<vmem>>, vector<4x16xf32>
    tpu.vector_store %arg5[%c0_49, %c289], %48 {strides = array<i32>} : memref<8x342xf32, #tpu.memory_space<vmem>>, vector<4x16xf32>,
    %c0_50 = arith.constant 0 : index
    %c0_51 = arith.constant 0 : index
    %50 = vector.load %arg5[%c0_50, %c0_51] : memref<8x342xf32, #tpu.memory_space<vmem>>, vector<8x288xf32>
    %c0_52 = arith.constant 0 : index
    %c1 = arith.constant 1 : index
    %51 = vector.load %arg5[%c0_52, %c1] : memref<8x342xf32, #tpu.memory_space<vmem>>, vector<8x288xf32>
    %c0_53 = arith.constant 0 : index
    %c2 = arith.constant 2 : index
    %52 = vector.load %arg5[%c0_53, %c2] : memref<8x342xf32, #tpu.memory_space<vmem>>, vector<8x288xf32>
    %53 = tpu.concatenate %50, %51, %52 in 0 : vector<8x288xf32>, vector<8x288xf32>, vector<8x288xf32> -> vector<24x288xf32>
    %c0_54 = arith.constant 0 : index
    %c0_55 = arith.constant 0 : index
    %54 = vector.load %arg2[%c0_54, %c0_55] : memref<8x72xf32, #tpu.memory_space<vmem>>, vector<8x24xf32>
    %cst_56 = arith.constant dense<0.000000e+00> : vector<8x288xf32>
    %55 = tpu.matmul %54, %53, %cst_56 {dimension_numbers = #tpu.dot_dimension_numbers<[1], [0], [0], [1], [0, 0, 1, 1], [], []>} : vector<8x24xf32>, vector<24x288xf32>, vector<8x288xf32> -> vector<8x288xf32>
    %c0_57 = arith.constant 0 : index
    %c18 = arith.constant 18 : index
    %56 = vector.load %arg5[%c0_57, %c18] : memref<8x342xf32, #tpu.memory_space<vmem>>, vector<8x288xf32>
    %c0_58 = arith.constant 0 : index
    %c19_59 = arith.constant 19 : index
    %57 = vector.load %arg5[%c0_58, %c19_59] : memref<8x342xf32, #tpu.memory_space<vmem>>, vector<8x288xf32>
    %c0_60 = arith.constant 0 : index
    %c20 = arith.constant 20 : index
    %58 = vector.load %arg5[%c0_60, %c20] : memref<8x342xf32, #tpu.memory_space<vmem>>, vector<8x288xf32>
    %59 = tpu.concatenate %56, %57, %58 in 0 : vector<8x288xf32>, vector<8x288xf32>, vector<8x288xf32> -> vector<24x288xf32>
    %c0_61 = arith.constant 0 : index
    %c24 = arith.constant 24 : index
    %60 = vector.load %arg2[%c0_61, %c24] : memref<8x72xf32, #tpu.memory_space<vmem>>, vector<8x24xf32>
    %cst_62 = arith.constant dense<0.000000e+00> : vector<8x288xf32>
    %61 = tpu.matmul %60, %59, %cst_62 {dimension_numbers = #tpu.dot_dimension_numbers<[1], [0], [0], [1], [0, 0, 1, 1], [], []>} : vector<8x24xf32>, vector<24x288xf32>, vector<8x288xf32> -> vector<8x288xf32>
    %62 = arith.addf %55, %61 : vector<8x288xf32>
    %c0_63 = arith.constant 0 : index
    %c36 = arith.constant 36 : index
    %63 = vector.load %arg5[%c0_63, %c36] : memref<8x342xf32, #tpu.memory_space<vmem>>, vector<8x288xf32>
    %c0_64 = arith.constant 0 : index
    %c37_65 = arith.constant 37 : index
    %64 = vector.load %arg5[%c0_64, %c37_65] : memref<8x342xf32, #tpu.memory_space<vmem>>, vector<8x288xf32>
    %c0_66 = arith.constant 0 : index
    %c38 = arith.constant 38 : index
    %65 = vector.load %arg5[%c0_66, %c38] : memref<8x342xf32, #tpu.memory_space<vmem>>, vector<8x288xf32>
    %66 = tpu.concatenate %63, %64, %65 in 0 : vector<8x288xf32>, vector<8x288xf32>, vector<8x288xf32> -> vector<24x288xf32>
    %c0_67 = arith.constant 0 : index
    %c48_68 = arith.constant 48 : index
    %67 = vector.load %arg2[%c0_67, %c48_68] : memref<8x72xf32, #tpu.memory_space<vmem>>, vector<8x24xf32>
    %cst_69 = arith.constant dense<0.000000e+00> : vector<8x288xf32>
    %68 = tpu.matmul %67, %66, %cst_69 {dimension_numbers = #tpu.dot_dimension_numbers<[1], [0], [0], [1], [0, 0, 1, 1], [], []>} : vector<8x24xf32>, vector<24x288xf32>, vector<8x288xf32> -> vector<8x288xf32>
    %69 = arith.addf %62, %68 : vector<8x288xf32>
    %c0_70 = arith.constant 0 : index
    %c0_71 = arith.constant 0 : index
    %70 = vector.load %arg6[%c0_70, %c0_71] : memref<8x288xf32, #tpu.memory_space<vmem>>, vector<8x288xf32>
    tpu.vector_store %arg6[%c0_70, %c0_71], %69 {strides = array<i32>} : memref<8x288xf32, #tpu.memory_space<vmem>>, vector<8x288xf32>,
    %c0_72 = arith.constant 0 : index
    %c0_73 = arith.constant 0 : index
    %71 = vector.load %arg6[%c0_72, %c0_73] : memref<8x288xf32, #tpu.memory_space<vmem>>, vector<8x16xf32>
    %c0_74 = arith.constant 0 : index
    %c0_75 = arith.constant 0 : index
    %72 = vector.load %arg7[%c0_74, %c0_75] : memref<8x256xf32, #tpu.memory_space<vmem>>, vector<8x16xf32>
    tpu.vector_store %arg7[%c0_74, %c0_75], %71 {strides = array<i32>} : memref<8x256xf32, #tpu.memory_space<vmem>>, vector<8x16xf32>,
    %c0_76 = arith.constant 0 : index
    %c18_77 = arith.constant 18 : index
    %73 = vector.load %arg6[%c0_76, %c18_77] : memref<8x288xf32, #tpu.memory_space<vmem>>, vector<8x16xf32>
    %c0_78 = arith.constant 0 : index
    %c16_79 = arith.constant 16 : index
    %74 = vector.load %arg7[%c0_78, %c16_79] : memref<8x256xf32, #tpu.memory_space<vmem>>, vector<8x16xf32>
    tpu.vector_store %arg7[%c0_78, %c16_79], %73 {strides = array<i32>} : memref<8x256xf32, #tpu.memory_space<vmem>>, vector<8x16xf32>,
    %c0_80 = arith.constant 0 : index
    %c36_81 = arith.constant 36 : index
    %75 = vector.load %arg6[%c0_80, %c36_81] : memref<8x288xf32, #tpu.memory_space<vmem>>, vector<8x16xf32>
    %c0_82 = arith.constant 0 : index
    %c32_83 = arith.constant 32 : index
    %76 = vector.load %arg7[%c0_82, %c32_83] : memref<8x256xf32, #tpu.memory_space<vmem>>, vector<8x16xf32>
    tpu.vector_store %arg7[%c0_82, %c32_83], %75 {strides = array<i32>} : memref<8x256xf32, #tpu.memory_space<vmem>>, vector<8x16xf32>,
    %c0_84 = arith.constant 0 : index
    %c54 = arith.constant 54 : index
    %77 = vector.load %arg6[%c0_84, %c54] : memref<8x288xf32, #tpu.memory_space<vmem>>, vector<8x16xf32>
    %c0_85 = arith.constant 0 : index
    %c48_86 = arith.constant 48 : index
    %78 = vector.load %arg7[%c0_85, %c48_86] : memref<8x256xf32, #tpu.memory_space<vmem>>, vector<8x16xf32>
    tpu.vector_store %arg7[%c0_85, %c48_86], %77 {strides = array<i32>} : memref<8x256xf32, #tpu.memory_space<vmem>>, vector<8x16xf32>,
    %c0_87 = arith.constant 0 : index
    %c72 = arith.constant 72 : index
    %79 = vector.load %arg6[%c0_87, %c72] : memref<8x288xf32, #tpu.memory_space<vmem>>, vector<8x16xf32>
    %c0_88 = arith.constant 0 : index
    %c64_89 = arith.constant 64 : index
    %80 = vector.load %arg7[%c0_88, %c64_89] : memref<8x256xf32, #tpu.memory_space<vmem>>, vector<8x16xf32>
    tpu.vector_store %arg7[%c0_88, %c64_89], %79 {strides = array<i32>} : memref<8x256xf32, #tpu.memory_space<vmem>>, vector<8x16xf32>,
    %c0_90 = arith.constant 0 : index
    %c90 = arith.constant 90 : index
    %81 = vector.load %arg6[%c0_90, %c90] : memref<8x288xf32, #tpu.memory_space<vmem>>, vector<8x16xf32>
    %c0_91 = arith.constant 0 : index
    %c80_92 = arith.constant 80 : index
    %82 = vector.load %arg7[%c0_91, %c80_92] : memref<8x256xf32, #tpu.memory_space<vmem>>, vector<8x16xf32>
    tpu.vector_store %arg7[%c0_91, %c80_92], %81 {strides = array<i32>} : memref<8x256xf32, #tpu.memory_space<vmem>>, vector<8x16xf32>,
    %c0_93 = arith.constant 0 : index
    %c108 = arith.constant 108 : index
    %83 = vector.load %arg6[%c0_93, %c108] : memref<8x288xf32, #tpu.memory_space<vmem>>, vector<8x16xf32>
    %c0_94 = arith.constant 0 : index
    %c96_95 = arith.constant 96 : index
    %84 = vector.load %arg7[%c0_94, %c96_95] : memref<8x256xf32, #tpu.memory_space<vmem>>, vector<8x16xf32>
    tpu.vector_store %arg7[%c0_94, %c96_95], %83 {strides = array<i32>} : memref<8x256xf32, #tpu.memory_space<vmem>>, vector<8x16xf32>,
    %c0_96 = arith.constant 0 : index
    %c126 = arith.constant 126 : index
    %85 = vector.load %arg6[%c0_96, %c126] : memref<8x288xf32, #tpu.memory_space<vmem>>, vector<8x16xf32>
    %c0_97 = arith.constant 0 : index
    %c112_98 = arith.constant 112 : index
    %86 = vector.load %arg7[%c0_97, %c112_98] : memref<8x256xf32, #tpu.memory_space<vmem>>, vector<8x16xf32>
    tpu.vector_store %arg7[%c0_97, %c112_98], %85 {strides = array<i32>} : memref<8x256xf32, #tpu.memory_space<vmem>>, vector<8x16xf32>,
    %c0_99 = arith.constant 0 : index
    %c144_100 = arith.constant 144 : index
    %87 = vector.load %arg6[%c0_99, %c144_100] : memref<8x288xf32, #tpu.memory_space<vmem>>, vector<8x16xf32>
    %c0_101 = arith.constant 0 : index
    %c128_102 = arith.constant 128 : index
    %88 = vector.load %arg7[%c0_101, %c128_102] : memref<8x256xf32, #tpu.memory_space<vmem>>, vector<8x16xf32>
    tpu.vector_store %arg7[%c0_101, %c128_102], %87 {strides = array<i32>} : memref<8x256xf32, #tpu.memory_space<vmem>>, vector<8x16xf32>,
    %c0_103 = arith.constant 0 : index
    %c162 = arith.constant 162 : index
    %89 = vector.load %arg6[%c0_103, %c162] : memref<8x288xf32, #tpu.memory_space<vmem>>, vector<8x16xf32>
    %c0_104 = arith.constant 0 : index
    %c144_105 = arith.constant 144 : index
    %90 = vector.load %arg7[%c0_104, %c144_105] : memref<8x256xf32, #tpu.memory_space<vmem>>, vector<8x16xf32>
    tpu.vector_store %arg7[%c0_104, %c144_105], %89 {strides = array<i32>} : memref<8x256xf32, #tpu.memory_space<vmem>>, vector<8x16xf32>,
    %c0_106 = arith.constant 0 : index
    %c180 = arith.constant 180 : index
    %91 = vector.load %arg6[%c0_106, %c180] : memref<8x288xf32, #tpu.memory_space<vmem>>, vector<8x16xf32>
    %c0_107 = arith.constant 0 : index
    %c160_108 = arith.constant 160 : index
    %92 = vector.load %arg7[%c0_107, %c160_108] : memref<8x256xf32, #tpu.memory_space<vmem>>, vector<8x16xf32>
    tpu.vector_store %arg7[%c0_107, %c160_108], %91 {strides = array<i32>} : memref<8x256xf32, #tpu.memory_space<vmem>>, vector<8x16xf32>,
    %c0_109 = arith.constant 0 : index
    %c198 = arith.constant 198 : index
    %93 = vector.load %arg6[%c0_109, %c198] : memref<8x288xf32, #tpu.memory_space<vmem>>, vector<8x16xf32>
    %c0_110 = arith.constant 0 : index
    %c176_111 = arith.constant 176 : index
    %94 = vector.load %arg7[%c0_110, %c176_111] : memref<8x256xf32, #tpu.memory_space<vmem>>, vector<8x16xf32>
    tpu.vector_store %arg7[%c0_110, %c176_111], %93 {strides = array<i32>} : memref<8x256xf32, #tpu.memory_space<vmem>>, vector<8x16xf32>,
    %c0_112 = arith.constant 0 : index
    %c216 = arith.constant 216 : index
    %95 = vector.load %arg6[%c0_112, %c216] : memref<8x288xf32, #tpu.memory_space<vmem>>, vector<8x16xf32>
    %c0_113 = arith.constant 0 : index
    %c192_114 = arith.constant 192 : index
    %96 = vector.load %arg7[%c0_113, %c192_114] : memref<8x256xf32, #tpu.memory_space<vmem>>, vector<8x16xf32>
    tpu.vector_store %arg7[%c0_113, %c192_114], %95 {strides = array<i32>} : memref<8x256xf32, #tpu.memory_space<vmem>>, vector<8x16xf32>,
    %c0_115 = arith.constant 0 : index
    %c234 = arith.constant 234 : index
    %97 = vector.load %arg6[%c0_115, %c234] : memref<8x288xf32, #tpu.memory_space<vmem>>, vector<8x16xf32>
    %c0_116 = arith.constant 0 : index
    %c208_117 = arith.constant 208 : index
    %98 = vector.load %arg7[%c0_116, %c208_117] : memref<8x256xf32, #tpu.memory_space<vmem>>, vector<8x16xf32>
    tpu.vector_store %arg7[%c0_116, %c208_117], %97 {strides = array<i32>} : memref<8x256xf32, #tpu.memory_space<vmem>>, vector<8x16xf32>,
    %c0_118 = arith.constant 0 : index
    %c252 = arith.constant 252 : index
    %99 = vector.load %arg6[%c0_118, %c252] : memref<8x288xf32, #tpu.memory_space<vmem>>, vector<8x16xf32>
    %c0_119 = arith.constant 0 : index
    %c224_120 = arith.constant 224 : index
    %100 = vector.load %arg7[%c0_119, %c224_120] : memref<8x256xf32, #tpu.memory_space<vmem>>, vector<8x16xf32>
    tpu.vector_store %arg7[%c0_119, %c224_120], %99 {strides = array<i32>} : memref<8x256xf32, #tpu.memory_space<vmem>>, vector<8x16xf32>,
    %c0_121 = arith.constant 0 : index
    %c270 = arith.constant 270 : index
    %101 = vector.load %arg6[%c0_121, %c270] : memref<8x288xf32, #tpu.memory_space<vmem>>, vector<8x16xf32>
    %c0_122 = arith.constant 0 : index
    %c240_123 = arith.constant 240 : index
    %102 = vector.load %arg7[%c0_122, %c240_123] : memref<8x256xf32, #tpu.memory_space<vmem>>, vector<8x16xf32>
    tpu.vector_store %arg7[%c0_122, %c240_123], %101 {strides = array<i32>} : memref<8x256xf32, #tpu.memory_space<vmem>>, vector<8x16xf32>,
    %c0_124 = arith.constant 0 : index
    %c0_125 = arith.constant 0 : index
    %103 = vector.load %arg7[%c0_124, %c0_125] : memref<8x256xf32, #tpu.memory_space<vmem>>, vector<8x256xf32>
    %c0_126 = arith.constant 0 : index
    %c0_127 = arith.constant 0 : index
    %104 = vector.load %arg3[%c0_126, %c0_127] : memref<8x1xf32, #tpu.memory_space<vmem>>, vector<8x1xf32>
    %105 = vector.broadcast %104 : vector<8x1xf32> to vector<8x256xf32>
    %106 = arith.addf %103, %105 : vector<8x256xf32>
    %cst_128 = arith.constant 0.000000e+00 : f32
    %107 = vector.broadcast %cst_128 : f32 to vector<8x256xf32>
    %108 = arith.cmpf oge, %106, %107 : vector<8x256xf32>
    %cst_129 = arith.constant 2.000000e-01 : f32
    %109 = vector.broadcast %cst_129 : f32 to vector<8x256xf32>
    %110 = arith.mulf %109, %106 : vector<8x256xf32>
    %111 = arith.select %108, %106, %110 : vector<8x256xi1>, vector<8x256xf32>
    %cst_130 = arith.constant 1.41421354 : f32
    %112 = vector.broadcast %cst_130 : f32 to vector<8x256xf32>
    %113 = arith.mulf %111, %112 : vector<8x256xf32>
    %c0_131 = arith.constant 0 : index
    %c0_132 = arith.constant 0 : index
    %c0_133 = arith.constant 0 : index
    %114 = vector.load %arg4[%c0_131, %c0_132, %c0_133] : memref<1x8x256xf32, #tpu.memory_space<vmem>>, vector<1x8x256xf32>
    %115 = vector.shape_cast %114 : vector<1x8x256xf32> to vector<8x256xf32>
    %116 = vector.shape_cast %113 : vector<8x256xf32> to vector<1x8x256xf32>
    tpu.vector_store %arg4[%c0_131, %c0_132, %c0_133], %116 {strides = array<i32>} : memref<1x8x256xf32, #tpu.memory_space<vmem>>, vector<1x8x256xf32>,
    return
  }
  func.func @transform_0(%arg0: i32) -> (i32, i32, i32) {
    %c0_i32 = arith.constant 0 : i32
    %c0_i32_0 = arith.constant 0 : i32
    %c0_i32_1 = arith.constant 0 : i32
    return %arg0, %c0_i32, %c0_i32_0 : i32, i32, i32
  }
  func.func @transform_1(%arg0: i32) -> (i32, i32) {
    %c0_i32 = arith.constant 0 : i32
    %c0_i32_0 = arith.constant 0 : i32
    %c0_i32_1 = arith.constant 0 : i32
    return %c0_i32, %c0_i32_0 : i32, i32
  }
  func.func @transform_2(%arg0: i32) -> (i32, i32) {
    %c0_i32 = arith.constant 0 : i32
    %c0_i32_0 = arith.constant 0 : i32
    %c0_i32_1 = arith.constant 0 : i32
    return %c0_i32, %c0_i32_0 : i32, i32
  }
  func.func @transform_3(%arg0: i32) -> (i32, i32, i32) {
    %c0_i32 = arith.constant 0 : i32
    %c0_i32_0 = arith.constant 0 : i32
    %c0_i32_1 = arith.constant 0 : i32
    return %arg0, %c0_i32, %c0_i32_0 : i32, i32, i32
  }
}

</mosaic_0001>

<bundles_post_ra>
// kernel: tpu_custom_call.1
= control target key start
LH: loop header
LB: loop body
LE: loop exit
PB: predicated region body
PF: predicated region fallthrough
CT: control target
= control target key end

     0   :  { %8 = vsyncpa [#allocation6], 0  ;;  %s1643_s0 = inlined_call_operand.hbm [shape: f32[2,4,256], index: 0, kind: input, shape index: {}]   ;;  %s1644_s1 = inlined_call_operand.vmem [shape: f32[8,72], index: 1, kind: input, shape index: {}]   ;;  %s1645_s2 = inlined_call_operand.vmem [shape: f32[8,1], index: 2, kind: input, shape index: {}]   ;;  %s1646_s3 = inlined_call_operand.hbm [shape: f32[2,8,256], index: 3, kind: output, shape index: {}]  }
   0x1   :  { %10 = vsyncpa [#allocation6 + $0x1], 0 }
   0x2   :  { %11 = vsyncpa [#allocation7], 0 }
   0x3   :  { %13 = vsyncpa [#allocation7 + $0x1], 0  ;;  %s1364_s12 = smov 0   ;;  %s1366_s13 = smov 0  }
   0x4   :  { %s1368_s14 = smov 0   ;;  %s1370_s15 = smov 0  }
   0x5 LB: > { %s1385_s16 = sadd.s32 4294967295, %s1303_s15   ;;  %s1065_s17 = sadd.s32 4294967294, %s1303_s15   ;;  %s1303_s15 = sphi %s1370_s15, %s1663_s15   ;;  %s1299_s14 = sphi %s1368_s14, %s1662_s14   ;;  %s1295_s13 = sphi %s1366_s13, %s1661_s13   ;;  %s1291_s12 = sphi %s1364_s12, %s1660_s12  }
   0x6   : > { %s1389_s18 = sadd.s32 1, %s1303_s15   ;;  %s26_s19 = sadd.s32 1, %s1299_s14 }
   0x7   : > { %s23_s20 = ssub.s32 %s1303_s15, %s1389_s18  ;;  %p33_p0 = scmp.ne.s32.totalorder %s1299_s14, %s1295_s13 }
   0x8   : > { %p24_p1 = scmp.eq.s32.totalorder %s23_s20, 0  ;;  %p34_p2 = scmp.eq.s32.totalorder %s1303_s15, 0 }
   0x9   : > { %p39_p3 = scmp.ne.s32.totalorder %s1295_s13, %s1291_s12  ;;  %p40_p4 = scmp.eq.s32.totalorder %s1385_s16, 0 }
   0xa   : > { %s1401_s21 = scalar_select %p24_p1, %s1299_s14, %s26_s19  }
   0xb   : > { %p1403_p5 = por %p34_p2, %p33_p0  ;;  %p1407_p6 = por %p40_p4, %p39_p3 }
   0xc   : > { %p105_p7 = scmp.eq.s32.totalorder %s1385_s16, 1  ;;  %p111_p8 = scmp.eq.s32.totalorder %s1065_s17, 1 }
   0xd   : > { %s1650_s23 = scalar_select %p1407_p6, 1, 0 }
   0xe   : > { %p1138_p10 = scmp.lt.s32.totalorder %s1303_s15, 2  ;;  %p1414_p11 = por %p105_p7, %p33_p0 }
   0xf   : > { %p1418_p12 = por %p111_p8, %p39_p3  ;;  %s137_s26 = sand.u32 1, %s1299_s14  }
  0x10   : > { %s1651_s24 = scalar_select %p1414_p11, 1, 0 }
  0x11   : > { %s1652_s25 = scalar_select %p1418_p12, 1, 0 }
  0x12   : > { %s1085_s27 = sshll.u32 %s1303_s15, 7  ;;  %s1068_s28 = sshll.u32 %s137_s26, 3 }
  0x13   : > { %s1427_s4 = scalar_lea.hbm %s1643_s0, %s1085_s27  ;;  %s141_s5 = scalar_lea.vmem [#allocation5], %s1068_s28 }
  0x14   : > { %s149_s6 = sshll.u32 %s141_s5, 4  ;;  %p1431_p13 = pnand %p1138_p10, %p1403_p5  ;;  %s1435_s6 = int_to_ptr.vmem [resolvable:$true] %s149_s6 }
  0x15   : > { %s138_s8 = scalar_lea.sflag [#allocation6], %s137_s26  ;;  %s1211_s9 = scalar_lea.hbm %s1427_s4, 128 }
  0x16   : > { %p1212_p2 = scmp.ne.s32.totalorder %s1427_s4, %s1211_s9  ;;  %p1213_p3 = pneg %p1431_p13 }
  0x17   : > { %s1216_s17 = scalar_lea.hbm %s1643_s0, 256  ;;  %p1217_p5 = scmp.lt.s32.totalorder %s1427_s4, %s1643_s0 }
  0x18   : > { %p1214_p4 = pnand %p1213_p3, %p1212_p2  ;;  %p1218_p8 = scmp.lt.s32.totalorder %s1216_s17, %s1211_s9 }
  0x1a   : > { %p1215_p7 = pneg %p1214_p4  ;;  %p1219_p10 = por %p1218_p8, %p1217_p5 }
  0x1c   : > { %p1220_p9 = pnand %p1219_p10, %p1215_p7 }
  0x1e   : > { %1223 = shalt.err (!%p1220_p9)
}
  0x1f   : > { %s1224_s22 = scalar_lea.vmem %s1435_s6, 128  ;;  %s1305_s26 = smov [#allocation5]  }
  0x20   : > { %p1225_p0 = scmp.ne.s32.totalorder %s1435_s6, %s1224_s22  ;;  %s1229_s27 = sshll.u32 %s1305_s26, 4  ;;  %s1230_s27 = int_to_ptr.vmem [resolvable:$false] %s1229_s27 }
  0x21   : > { %s1231_s28 = scalar_lea.vmem %s1230_s27, 256  ;;  %p1232_p4 = scmp.lt.s32.totalorder %s1435_s6, %s1230_s27 }
  0x22   : > { %p1227_p1 = pnand %p1225_p0, %p1213_p3  ;;  %p1233_p12 = scmp.lt.s32.totalorder %s1231_s28, %s1224_s22 }
  0x24   : > { %p1228_p2 = pneg %p1227_p1  ;;  %p1234_p11 = por %p1233_p12, %p1232_p4 }
  0x26   : > { %p1235_p6 = pnand %p1234_p11, %p1228_p2 }
  0x28   : > { %1238 = shalt.err (!%p1235_p6)
}
  0x29   : > { %1133 = dma.hbm_to_vmem [thread:$0]  (!%p1431_p13), %s1427_s4, 128, %s1435_s6, %s138_s8  }
  0x2a   : > { %p1654_p9 = scmp.lt.s32.totalorder %s1303_s15, 3  ;;  %p1655_p7 = scmp.ge.s32.totalorder %s1303_s15, 1 }
  0x2c   : > { %p155_p0 = pnand %p1655_p7, %p1654_p9 }
  0x2d   : > { %s1462_s29 = sand.u32 (!%p155_p0), 1, %s1295_s13   ;;  %p1656_p6 = scmp.ne.s32.totalorder (!%p155_p0), %s1650_s23, 0 }
  0x2e   : > { %158 = sbr.rel (%p155_p0) target bundleno = 846 (0x34e), region = 32  ;;  %s1072_s30 = sshll.u32 (!%p155_p0), %s1462_s29, 3 }
  0x2f   : > { %s161_s5 = scalar_lea.sflag (!%p155_p0), [#allocation6], %s1462_s29  ;;  %s1466_s9 = scalar_lea.vmem (!%p155_p0), [#allocation5], %s1072_s30 }
  0x33   : > { %1282 = dma.done.wait (%p1656_p6), %s161_s5, 128  }
  0x34   : > { %1284 = vsyncadd (%p1656_p6), %s161_s5, 4294967168  ;;  %v1306_v0 = vmov 0.0   ;;  %v233_v1 = vld [vmem:[%s1466_s9] sm:$0xf]  ;;  %s1307_s4 = smov 31   ;;  %s1308_s23 = smov 19  }
  0x35   : > { %188 = vst [vmem:[#allocation2 + $0x8] sm:$0xff] %v1306_v0  ;;  %187 = vst [vmem:[#allocation2] sm:$0xff] %v1306_v0  ;;  %1099 = vmatprep.subr.mxu1 %v1306_v0  ;;  %442 = vmatprep.mubr.f32.mxu0 %v1306_v0  ;;  %v191_v2 = vld [vmem:[%s1466_s9] sm:$0xf]  ;;  %v249_v4 = vld [vmem:[%s1466_s9 + $0x4] sm:$0xf] }
  0x36   : > { %235 = vrot.lane.b32.xlu0 %v233_v1, %s1307_s4  ;;  %193 = vrot.lane.b32.xlu1 %v191_v2, %s1308_s23  ;;  %v242_v3 = vld [vmem:[%s1466_s9] sm:$0xf]  ;;  %s1309_s6 = smov 33   ;;  %s1310_s7 = smov 35   ;;  %v256_v6 = vld [vmem:[%s1466_s9 + $0x4] sm:$0xf] }
  0x37   : > { %v198_v5 = vld [vmem:[%s1466_s9] sm:$0xf]  ;;  %vm189_vm0 = vcmask 703488   ;;  %s1311_s8 = smov 21   ;;  %s1312_s10 = smov 37   ;;  %vm240_vm1 = vcmask 117760  }
  0x38   : > { %190 = vst.msk [vmem:[#allocation2 + $0x10] sm:$0xff] %vm189_vm0, %v1306_v0  ;;  %v205_v7 = vld [vmem:[%s1466_s9] sm:$0xf]  ;;  %v263_v8 = vld [vmem:[%s1466_s9 + $0x4] sm:$0xf]  ;;  %s1313_s11 = smov 23  }
  0x39   : > { %s1314_s17 = smov 39   ;;  %v212_v9 = vld [vmem:[%s1466_s9] sm:$0xf]  ;;  %v270_v10 = vld [vmem:[%s1466_s9 + $0x4] sm:$0xf]  ;;  %s1315_s19 = smov 25  }
  0x3a   : > { %244 = vrot.lane.b32.xlu0 %v242_v3, %s1309_s6  ;;  %251 = vrot.lane.b32.xlu1 %v249_v4, %s1310_s7  ;;  %s1316_s20 = smov 41   ;;  %v284_v11 = vld [vmem:[%s1466_s9 + $0x4] sm:$0xf]  ;;  %v219_v12 = vld [vmem:[%s1466_s9] sm:$0xf]  ;;  %s1317_s22 = smov 45  }
  0x3b   : > { %s1318_s26 = smov 27   ;;  %v277_v13 = vld [vmem:[%s1466_s9 + $0x4] sm:$0xf]  ;;  %s1319_s27 = smov 43   ;;  %v226_v15 = vld [vmem:[%s1466_s9] sm:$0xf] }
  0x3c   : > { %v293_v14 = vld [vmem:[%s1466_s9 + $0x4] sm:$0xf]  ;;  %s1320_s28 = smov 47   ;;  %s1321_s30 = smov 29   ;;  %vm196_vm2 = vcmask 281752   ;;  %vm247_vm3 = vcmask 265352  }
  0x3d   : > { %v300_v16 = vld [vmem:[%s1466_s9 + $0x4] sm:$0xf]  ;;  %s1322_s5 = smov 49   ;;  %vm254_vm4 = vcmask 412952   ;;  %vm203_vm5 = vcmask 429352   ;;  %vm261_vm6 = vcmask 560552  }
  0x3e   : > { %200 = vrot.lane.b32.xlu0 %v198_v5, %s1311_s8  ;;  %258 = vrot.lane.b32.xlu1 %v256_v6, %s1312_s10  ;;  %vm210_vm7 = vcmask 576952   ;;  %vm268_vm8 = vcmask 708152   ;;  %vm217_vm9 = vcmask 724552   ;;  %vm275_vm10 = vcmask 855752   ;;  %s1323_s9 = smov 126   ;;  %s1324_s4 = smov 127  }
  0x3f   : > { %vm291_vm11 = vcmask 101376   ;;  %vm224_vm12 = vcmask 872152   ;;  %vm282_vm13 = vcmask 1003352   ;;  %vm298_vm14 = vcmask 248952   ;;  %s1325_s23 = smov 110   ;;  %v1515_v36 = vld [vmem:[%s1644_s1] sm:$0xff] }
  0x40   : > { %vm289_vm15 = vcmask 1044456   ;;  %vm231_vm0 = vcmask 1019752   ;;  %s1326_s8 = smov 104   ;;  %s1328_s10 = smov 92  }
  0x41   : > { %p1657_p12 = scmp.ne.s32.totalorder %s1651_s24, 0 }
  0x42   : > { %207 = vrot.lane.b32.xlu0 %v205_v7, %s1313_s11  ;;  %265 = vrot.lane.b32.xlu1 %v263_v8, %s1314_s17  ;;  %s1329_s11 = smov 80   ;;  %s1331_s17 = smov 100  }
  0x46   : > { %214 = vrot.lane.b32.xlu0 %v212_v9, %s1315_s19  ;;  %272 = vrot.lane.b32.xlu1 %v270_v10, %s1316_s20  ;;  %s1332_s19 = smov 114   ;;  %s1333_s20 = smov 124  }
  0x4a   : > { %286 = vrot.lane.b32.xlu0 %v284_v11, %s1317_s22  ;;  %221 = vrot.lane.b32.xlu1 %v219_v12, %s1318_s26  ;;  %s1334_s22 = smov 112   ;;  %s1335_s26 = smov 122  }
  0x4e   : > { %279 = vrot.lane.b32.xlu0 %v277_v13, %s1319_s27  ;;  %295 = vrot.lane.b32.xlu1 %v293_v14, %s1320_s28  ;;  %s1336_s27 = smov 120   ;;  %s1337_s28 = smov 108  }
  0x52   : > { %228 = vrot.lane.b32.xlu0 %v226_v15, %s1321_s30  ;;  %302 = vrot.lane.b32.xlu1 %v300_v16, %s1322_s5  ;;  %v1330_v16 = vmov 0   ;;  %s1338_s30 = smov 118   ;;  %s1339_s5 = smov 106  }
  0x53   : > { %1209 = vset.pattern.permute.xlu1 %v1330_v16  ;;  %1210 = vset.pattern.permute.xlu0 %v1330_v16 }
  0xa8   : > { %v236_v17 = vpop.permute.xlu0 %235  ;;  %v194_v18 = vpop.permute.xlu1 %193 }
  0xa9   : > { %241 = vst.msk [vmem:[#allocation2 + $0x8] sm:$0xf] %vm240_vm1, %v236_v17  ;;  %vm305_vm1 = vcmask 396552  }
  0xaa   : > { %197 = vst.msk [vmem:[#allocation2] sm:$0xf] %vm196_vm2, %v194_v18  ;;  %vm238_vm2 = vcmask 1044472  }
  0xac   : > { %v245_v19 = vpop.permute.xlu0 %244  ;;  %v252_v20 = vpop.permute.xlu1 %251 }
  0xad   : > { %248 = vst.msk [vmem:[#allocation2 + $0x8] sm:$0xf] %vm247_vm3, %v245_v19  ;;  %vm1327_vm3 = vmmov 0  }
  0xae   : > { %255 = vst.msk [vmem:[#allocation2 + $0x8] sm:$0xf] %vm254_vm4, %v252_v20  ;;  %1105 = vmatprep.mubr.msk.f32.mxu1 %vm1327_vm3, %v1306_v0  ;;  %vm319_vm4 = vcmask 1039360  }
  0xb0   : > { %v201_v21 = vpop.permute.xlu0 %200  ;;  %v259_v22 = vpop.permute.xlu1 %258 }
  0xb1   : > { %204 = vst.msk [vmem:[#allocation2] sm:$0xf] %vm203_vm5, %v201_v21  ;;  %vm331_vm5 = vcmask 1031168  }
  0xb2   : > { %262 = vst.msk [vmem:[#allocation2 + $0x8] sm:$0xf] %vm261_vm6, %v259_v22  ;;  %vm375_vm6 = vcmask 195584  }
  0xb4   : > { %v208_v23 = vpop.permute.xlu0 %207  ;;  %v266_v24 = vpop.permute.xlu1 %265 }
  0xb5   : > { %211 = vst.msk [vmem:[#allocation2] sm:$0xf] %vm210_vm7, %v208_v23  ;;  %vm359_vm7 = vcmask 900096  }
  0xb6   : > { %269 = vst.msk [vmem:[#allocation2 + $0x8] sm:$0xf] %vm268_vm8, %v266_v24  ;;  %vm682_vm8 = vcmask 752640  }
  0xb8   : > { %v215_v25 = vpop.permute.xlu0 %214  ;;  %v273_v26 = vpop.permute.xlu1 %272 }
  0xb9   : > { %218 = vst.msk [vmem:[#allocation2] sm:$0xf] %vm217_vm9, %v215_v25  ;;  %vm846_vm9 = vcmask 261120  }
  0xba   : > { %276 = vst.msk [vmem:[#allocation2 + $0x8] sm:$0xf] %vm275_vm10, %v273_v26  ;;  %vm849_vm10 = vcmask 130048  }
  0xbc   : > { %v287_v27 = vpop.permute.xlu0 %286  ;;  %v222_v28 = vpop.permute.xlu1 %221 }
  0xbd   : > { %292 = vst.msk [vmem:[#allocation2 + $0x10] sm:$0xf] %vm291_vm11, %v287_v27  ;;  %vm856_vm11 = vcmask 261248  }
  0xbe   : > { %225 = vst.msk [vmem:[#allocation2] sm:$0xf] %vm224_vm12, %v222_v28  ;;  %vm863_vm12 = vcmask 392448  }
  0xc0   : > { %v280_v29 = vpop.permute.xlu0 %279  ;;  %v296_v30 = vpop.permute.xlu1 %295 }
  0xc1   : > { %283 = vst.msk [vmem:[#allocation2 + $0x8] sm:$0xf] %vm282_vm13, %v280_v29  ;;  %vm870_vm13 = vcmask 523648  }
  0xc2   : > { %299 = vst.msk [vmem:[#allocation2 + $0x10] sm:$0xf] %vm298_vm14, %v296_v30  ;;  %vm877_vm14 = vcmask 654848  }
  0xc3   : > { %290 = vst.msk [vmem:[#allocation2 + $0x8] sm:$0xf] %vm289_vm15, %v287_v27  ;;  %vm884_vm15 = vcmask 786048  }
  0xc4   : > { %v229_v31 = vpop.permute.xlu0 %228  ;;  %v303_v32 = vpop.permute.xlu1 %302 }
  0xc5   : > { %232 = vst.msk [vmem:[#allocation2] sm:$0xf] %vm231_vm0, %v229_v31  ;;  %vm891_vm0 = vcmask 917248  }
  0xc6   : > { %306 = vst.msk [vmem:[#allocation2 + $0x10] sm:$0xf] %vm305_vm1, %v303_v32  ;;  %vm950_vm1 = vcmask 818176  }
  0xc7   : > { %239 = vst.msk [vmem:[#allocation2] sm:$0xf] %vm238_vm2, %v236_v17  ;;  %vm901_vm2 = vcmask 932864  }
  0xca   : > { %v1501_v35 = vld [vmem:[#allocation2 + $0x8] sm:$0xff] }
  0xcd   : > { %v1493_v33 = vld [vmem:[#allocation2 + $0x10] sm:$0xff] }
  0xce   : > { %329 = vrot.lane.b32.xlu1 %v1493_v33, %s1323_s9  ;;  %v1497_v34 = vld [vmem:[#allocation2] sm:$0xff] }
  0xcf   : > { %325 = vrot.lane.b32.xlu0 %v1497_v34, %s1323_s9 }
  0xd2   : > { %315 = vrot.lane.b32.xlu1 %v1501_v35, %s1324_s4 }
  0xd3   : > { %327 = vrot.lane.b32.xlu0 %v1501_v35, %s1323_s9 }
  0xd6   : > { %313 = vrot.lane.b32.xlu1 %v1497_v34, %s1324_s4 }
  0xd7   : > { %317 = vrot.lane.b32.xlu0 %v1493_v33, %s1324_s4  ;;  %s1341_s4 = smov 102  }
  0xda   : > { %345 = vrot.lane.b32.xlu1 %v1493_v33, %s1325_s23 }
  0xdb   : > { %341 = vrot.lane.b32.xlu0 %v1497_v34, %s1325_s23 }
  0xde   : > { %339 = vrot.lane.b32.xlu1 %v1515_v36, %s1326_s8 }
  0xdf   : > { %343 = vrot.lane.b32.xlu0 %v1501_v35, %s1325_s23 }
 0x140   : > { %v330_v37 = vpop.permute.xlu1 %329 }
 0x141   : > { %v326_v38 = vpop.permute.xlu0 %325  ;;  %357 = vrot.lane.b32.xlu1 %v330_v37, %s1325_s23 }
 0x144   : > { %v316_v39 = vpop.permute.xlu1 %315 }
 0x145   : > { %v328_v40 = vpop.permute.xlu0 %327  ;;  %680 = vrot.lane.b32.xlu1 %v330_v37, %s1328_s10 }
 0x146   : > { %v1533_v45 = vsel %vm331_vm5, %v328_v40, %v330_v37  ;;  %v332_v46 = vsel %vm331_vm5, %v326_v38, %v328_v40 }
 0x148   : > { %v314_v43 = vpop.permute.xlu1 %313 }
 0x149   : > { %v318_v41 = vpop.permute.xlu0 %317  ;;  %v1529_v44 = vsel %vm319_vm4, %v314_v43, %v316_v39 }
 0x14a   : > { %351 = vrot.lane.b32.xlu0 %v318_v41, %s1325_s23  ;;  %v1525_v42 = vsel %vm319_vm4, %v316_v39, %v318_v41 }
 0x14b   : > { %349 = vrot.lane.b32.xlu1 %v1525_v42, %s1325_s23 }
 0x14c   : > { %v346_v47 = vpop.permute.xlu1 %345 }
 0x14d   : > { %v342_v49 = vpop.permute.xlu0 %341 }
 0x14e   : > { %674 = vrot.lane.b32.xlu0 %v318_v41, %s1328_s10 }
 0x14f   : > { %347 = vrot.lane.b32.xlu1 %v1529_v44, %s1325_s23 }
 0x150   : > { %v340_v48 = vpop.permute.xlu1 %339 }
 0x151   : > { %v344_v51 = vpop.permute.xlu0 %343 }
 0x152   : > { %355 = vrot.lane.b32.xlu0 %v1533_v45, %s1325_s23  ;;  %v361_v3 = vsel %vm359_vm7, %v344_v51, %v346_v47  ;;  %v360_v5 = vsel %vm359_vm7, %v342_v49, %v344_v51 }
 0x153   : > { %668 = vrot.lane.b32.xlu1 %v1493_v33, %s1328_s10 }
 0x156   : > { %353 = vrot.lane.b32.xlu0 %v332_v46, %s1325_s23 }
 0x157   : > { %672 = vrot.lane.b32.xlu1 %v1525_v42, %s1328_s10 }
 0x15a   : > { %666 = vrot.lane.b32.xlu0 %v1501_v35, %s1328_s10 }
 0x15b   : > { %670 = vrot.lane.b32.xlu1 %v1529_v44, %s1328_s10 }
 0x15e   : > { %678 = vrot.lane.b32.xlu0 %v1533_v45, %s1328_s10 }
 0x15f   : > { %662 = vrot.lane.b32.xlu1 %v1515_v36, %s1329_s11 }
 0x162   : > { %676 = vrot.lane.b32.xlu0 %v332_v46, %s1328_s10 }
 0x166   : > { %664 = vrot.lane.b32.xlu0 %v1497_v34, %s1328_s10  ;;  %s1086_s10 = sshll.u32 %s1385_s16, 8  ;;  %s981_s16 = scalar_lea.sflag [#allocation7], %s1462_s29 }
 0x1b3   : > { %v358_v50 = vpop.permute.xlu1 %357 }
 0x1b4   : > { %1100 = vmatpush3.msra.mxu1 %v358_v50 }
 0x1b5   : > { %1101 = vmatprep.subr.mxu1 %v1306_v0 }
 0x1b7   : > { %v681_v52 = vpop.permute.xlu1 %680 }
 0x1bc   : > { %v352_v53 = vpop.permute.xlu0 %351 }
 0x1bd   : > { %v350_v54 = vpop.permute.xlu1 %349  ;;  %1102 = vmatpush3.msra.mxu1 %v352_v53 }
 0x1be   : > { %1103 = vmatprep.subr.mxu1 %v1306_v0  ;;  %v363_v63 = vsel %vm359_vm7, %v350_v54, %v352_v53 }
 0x1bf   : > { %1104 = vmatpush3.msra.mxu1 %v346_v47 }
 0x1c0   : > { %1106 = vmatmul.mubr.msk.f32.vlgmr.msra.gmra.mxu1 %vm375_vm6, %v340_v48  ;;  %1108 = vmatprep.subr.mxu1 %v1306_v0  ;;  %v675_v55 = vpop.permute.xlu0 %674 }
 0x1c1   : > { %v348_v56 = vpop.permute.xlu1 %347  ;;  %1109 = vmatpush3.msra.mxu1 %v330_v37  ;;  %1114 = vmatprep.mubr.msk.f32.mxu1 %vm1327_vm3, %v1306_v0 }
 0x1c2   : > { %1110 = vmatprep.subr.mxu1 %v1306_v0  ;;  %v362_v1 = vsel %vm359_vm7, %v348_v56, %v350_v54 }
 0x1c3   : > { %1111 = vmatpush3.msra.mxu1 %v318_v41 }
 0x1c4   : > { %1112 = vmatprep.subr.mxu1 %v1306_v0  ;;  %v356_v57 = vpop.permute.xlu0 %355 }
 0x1c5   : > { %v669_v58 = vpop.permute.xlu1 %668  ;;  %1113 = vmatpush3.msra.mxu1 %v1493_v33  ;;  %v365_v59 = vsel %vm359_vm7, %v356_v57, %v358_v50 }
 0x1c6   : > { %404 = vmatprep.subr.mxu0 %v365_v59  ;;  %1115 = vmatmul.mubr.msk.f32.vlgmr.msra.gmra.mxu1 %vm375_vm6, %v1515_v36 }
 0x1c7   : > { %1117 = vmatprep.subr.mxu1 %v1306_v0  ;;  %1123 = vmatprep.mubr.msk.f32.mxu1 %vm1327_vm3, %v1306_v0  ;;  %vm904_vm3 = vcmask 1048448  }
 0x1c8   : > { %1118 = vmatpush3.msra.mxu1 %v681_v52  ;;  %v354_v60 = vpop.permute.xlu0 %353 }
 0x1c9   : > { %1119 = vmatprep.subr.mxu1 %v1306_v0  ;;  %v673_v61 = vpop.permute.xlu1 %672  ;;  %v364_v62 = vsel %vm359_vm7, %v354_v60, %v356_v57 }
 0x1ca   : > { %1120 = vmatpush3.msra.mxu1 %v675_v55  ;;  %405 = vmatpush1.msra.mxu0 %v364_v62  ;;  %v686_v11 = vsel %vm682_vm8, %v673_v61, %v675_v55 }
 0x1cb   : > { %1121 = vmatprep.subr.mxu1 %v1306_v0  ;;  %406 = vmatprep.subr.mxu0 %v363_v63 }
 0x1cc   : > { %1122 = vmatpush3.msra.mxu1 %v669_v58  ;;  %407 = vmatpush1.msra.mxu0 %v362_v1  ;;  %v667_v2 = vpop.permute.xlu0 %666 }
 0x1cd   : > { %v671_v4 = vpop.permute.xlu1 %670  ;;  %408 = vmatprep.subr.mxu0 %v361_v3  ;;  %v684_v14 = vsel %vm682_vm8, %v667_v2, %v669_v58 }
 0x1ce   : > { %409 = vmatpush1.msra.mxu0 %v360_v5  ;;  %v685_v12 = vsel %vm682_vm8, %v671_v4, %v673_v61 }
 0x1cf   : > { %1074 = vmatmul.mubr.msk.f32.vlgmr.msra.gmra.mxu0 %vm375_vm6, %v340_v48  ;;  %547 = vmatprep.subr.mxu0 %v1533_v45 }
 0x1d0   : > { %548 = vmatpush1.msra.mxu0 %v332_v46  ;;  %v679_v6 = vpop.permute.xlu0 %678  ;;  %585 = vmatprep.mubr.f32.mxu0 %v1306_v0 }
 0x1d1   : > { %v663_v7 = vpop.permute.xlu1 %662  ;;  %549 = vmatprep.subr.mxu0 %v1525_v42  ;;  %v688_v9 = vsel %vm682_vm8, %v679_v6, %v681_v52 }
 0x1d2   : > { %550 = vmatpush1.msra.mxu0 %v1529_v44  ;;  %1124 = vmatmul.mubr.msk.f32.vlgmr.msra.gmra.mxu1 %vm375_vm6, %v663_v7 }
 0x1d3   : > { %551 = vmatprep.subr.mxu0 %v1501_v35  ;;  %v962_v35 = vld [vmem:[%s1645_s2] sm:$0xff] }
 0x1d4   : > { %552 = vmatpush1.msra.mxu0 %v1497_v34  ;;  %v677_v8 = vpop.permute.xlu0 %676 }
 0x1d5   : > { %v687_v10 = vsel %vm682_vm8, %v677_v8, %v679_v6  ;;  %1076 = vmatmul.mubr.msk.f32.vlgmr.msra.gmra.mxu0 %vm375_vm6, %v1515_v36  ;;  %726 = vmatprep.subr.mxu0 %v688_v9 }
 0x1d6   : > { %727 = vmatpush1.msra.mxu0 %v687_v10  ;;  %764 = vmatprep.mubr.f32.mxu0 %v1306_v0 }
 0x1d7   : > { %728 = vmatprep.subr.mxu0 %v686_v11 }
 0x1d8   : > { %729 = vmatpush1.msra.mxu0 %v685_v12  ;;  %v665_v13 = vpop.permute.xlu0 %664 }
 0x1d9   : > { %v683_v15 = vsel %vm682_vm8, %v665_v13, %v667_v2  ;;  %730 = vmatprep.subr.mxu0 %v684_v14 }
 0x1da   : > { %731 = vmatpush1.msra.mxu0 %v683_v15 }
 0x1db   : > { %1078 = vmatmul.mubr.msk.f32.vlgmr.msra.gmra.mxu0 %vm375_vm6, %v663_v7 }
 0x280   : > { %v515_v17 = vpop.f32.mrf.mxu1 }
 0x282   : > { %v1107_v18 = vpop.f32.mrf.mxu1 }
 0x286   : > { %v658_v19 = vpop.f32.mrf.mxu1 }
 0x287   : > { %v659_v21 = vadd.f32 %v658_v19, %v515_v17 }
 0x288   : > { %v1116_v0 = vpop.f32.mrf.mxu1 }
 0x28f   : > { %v444_v20 = vpop.f32.mrf.mxu0 }
 0x291   : > { %v446_v23 = vpop.f32.mrf.mxu0 }
 0x292   : > { %v837_v22 = vpop.f32.mrf.mxu1 }
 0x293   : > { %v843_v24 = vadd.f32 %v837_v22, %v659_v21 }
 0x294   : > { %v1125_v25 = vpop.f32.mrf.mxu1 }
 0x295   : > { %847 = vst.msk [vmem:[#allocation3 + $0x10] sm:$0xff] %vm846_vm9, %v843_v24  ;;  %v587_v26 = vpop.f32.mrf.mxu0 }
 0x296   : > { %v588_v28 = vadd.f32 %v587_v26, %v444_v20 }
 0x297   : > { %v589_v27 = vpop.f32.mrf.mxu0 }
 0x298   : > { %v590_v30 = vadd.f32 %v589_v27, %v446_v23 }
 0x29b   : > { %v766_v29 = vpop.f32.mrf.mxu0 }
 0x29c   : > { %v841_v31 = vadd.f32 %v766_v29, %v588_v28  ;;  %v943_v32 = vld [vmem:[#allocation3 + $0x10] sm:$0xff] }
 0x29d   : > { %948 = vrot.lane.b32.xlu0 %v943_v32, %s1331_s17  ;;  %v768_v33 = vpop.f32.mrf.mxu0 }
 0x29e   : > { %v842_v34 = vadd.f32 %v768_v33, %v590_v30  ;;  %853 = vrot.lane.b32.xlu1 %v841_v31, %s1323_s9  ;;  %850 = vst.msk [vmem:[#allocation4] sm:$0xff] %vm849_vm10, %v841_v31  ;;  %s1340_s9 = smov 116  }
 0x2a1   : > { %897 = vrot.lane.b32.xlu0 %v841_v31, %s1332_s19 }
 0x2a2   : > { %860 = vrot.lane.b32.xlu1 %v841_v31, %s1333_s20 }
 0x2a5   : > { %908 = vrot.lane.b32.xlu0 %v842_v34, %s1334_s22  ;;  %s1606_s22 = scalar_lea.hbm %s1646_s3, %s1086_s10 }
 0x2a6   : > { %867 = vrot.lane.b32.xlu1 %v841_v31, %s1335_s26 }
 0x2a9   : > { %914 = vrot.lane.b32.xlu0 %v842_v34, %s1325_s23  ;;  %s1342_s23 = smov 98  }
 0x2aa   : > { %874 = vrot.lane.b32.xlu1 %v841_v31, %s1336_s27  ;;  %s1343_s27 = smov [#allocation8]  }
 0x2ad   : > { %920 = vrot.lane.b32.xlu0 %v842_v34, %s1337_s28  ;;  %s1243_s28 = sshll.u32 %s1343_s27, 4  ;;  %s1244_s28 = int_to_ptr.vmem [resolvable:$false] %s1243_s28 }
 0x2ae   : > { %881 = vrot.lane.b32.xlu1 %v841_v31, %s1338_s30  ;;  %s1245_s30 = scalar_lea.vmem %s1244_s28, 512 }
 0x2b1   : > { %926 = vrot.lane.b32.xlu0 %v842_v34, %s1339_s5 }
 0x2b2   : > { %888 = vrot.lane.b32.xlu1 %v841_v31, %s1340_s9 }
 0x2b5   : > { %932 = vrot.lane.b32.xlu0 %v842_v34, %s1326_s8  ;;  %s1073_s8 = sshll.u32 %s1462_s29, 4 }
 0x2b6   : > { %946 = vrot.lane.b32.xlu1 %v842_v34, %s1331_s17  ;;  %s186_s11 = scalar_lea.vmem [#allocation8], %s1073_s8 }
 0x2b7   : > { %s995_s17 = sshll.u32 %s186_s11, 4  ;;  %s996_s17 = int_to_ptr.vmem [resolvable:$true] %s995_s17 }
 0x2b8   : > { %s1239_s26 = scalar_lea.vmem %s996_s17, 256  ;;  %p1246_p3 = scmp.lt.s32.totalorder %s996_s17, %s1244_s28 }
 0x2b9   : > { %938 = vrot.lane.b32.xlu0 %v842_v34, %s1341_s4  ;;  %p1240_p11 = scmp.ne.s32.totalorder %s996_s17, %s1239_s26  ;;  %p1247_p5 = scmp.lt.s32.totalorder %s1245_s30, %s1239_s26 }
 0x2ba   : > { %899 = vrot.lane.b32.xlu1 %v842_v34, %s1332_s19 }
 0x2bb   : > { %p1241_p13 = pnand %p1240_p11, %p1657_p12  ;;  %p1248_p8 = por %p1247_p5, %p1246_p3 }
 0x2bd   : > { %956 = vrot.lane.b32.xlu0 %v943_v32, %s1342_s23  ;;  %p1242_p1 = pneg %p1241_p13 }
 0x2be   : > { %965 = vperm.xlu1 %1209, %v962_v35  }
 0x2bf   : > { %p1249_p10 = pnand %p1248_p8, %p1242_p1 }
 0x30f   : > { %v949_v36 = vpop.permute.xlu0 %948 }
 0x310   : > { %v854_v37 = vpop.permute.xlu1 %853 }
 0x311   : > { %857 = vst.msk [vmem:[#allocation4] sm:$0xff] %vm856_vm11, %v854_v37 }
 0x313   : > { %v898_v38 = vpop.permute.xlu0 %897 }
 0x314   : > { %v861_v39 = vpop.permute.xlu1 %860 }
 0x315   : > { %864 = vst.msk [vmem:[#allocation4] sm:$0xff] %vm863_vm12, %v861_v39 }
 0x317   : > { %v909_v40 = vpop.permute.xlu0 %908 }
 0x318   : > { %911 = vst.msk [vmem:[#allocation4 + $0x8] sm:$0xff] %vm849_vm10, %v909_v40  ;;  %v868_v41 = vpop.permute.xlu1 %867 }
 0x319   : > { %871 = vst.msk [vmem:[#allocation4] sm:$0xff] %vm870_vm13, %v868_v41 }
 0x31b   : > { %v915_v42 = vpop.permute.xlu0 %914 }
 0x31c   : > { %917 = vst.msk [vmem:[#allocation4 + $0x8] sm:$0xff] %vm856_vm11, %v915_v42  ;;  %v875_v43 = vpop.permute.xlu1 %874 }
 0x31d   : > { %878 = vst.msk [vmem:[#allocation4] sm:$0xff] %vm877_vm14, %v875_v43 }
 0x31f   : > { %v921_v44 = vpop.permute.xlu0 %920 }
 0x320   : > { %923 = vst.msk [vmem:[#allocation4 + $0x8] sm:$0xff] %vm863_vm12, %v921_v44  ;;  %v882_v45 = vpop.permute.xlu1 %881 }
 0x321   : > { %885 = vst.msk [vmem:[#allocation4] sm:$0xff] %vm884_vm15, %v882_v45 }
 0x323   : > { %v927_v46 = vpop.permute.xlu0 %926 }
 0x324   : > { %929 = vst.msk [vmem:[#allocation4 + $0x8] sm:$0xff] %vm870_vm13, %v927_v46  ;;  %v889_v47 = vpop.permute.xlu1 %888 }
 0x325   : > { %892 = vst.msk [vmem:[#allocation4] sm:$0xff] %vm891_vm0, %v889_v47 }
 0x327   : > { %v933_v48 = vpop.permute.xlu0 %932 }
 0x328   : > { %935 = vst.msk [vmem:[#allocation4 + $0x8] sm:$0xff] %vm877_vm14, %v933_v48  ;;  %v947_v49 = vpop.permute.xlu1 %946 }
 0x329   : > { %v951_v51 = vsel %vm950_vm1, %v947_v49, %v949_v36 }
 0x32b   : > { %v939_v50 = vpop.permute.xlu0 %938 }
 0x32c   : > { %941 = vst.msk [vmem:[#allocation4 + $0x8] sm:$0xff] %vm884_vm15, %v939_v50  ;;  %v900_v52 = vpop.permute.xlu1 %899 }
 0x32d   : > { %953 = vst.msk [vmem:[#allocation4 + $0x8] sm:$0xff] %vm891_vm0, %v951_v51  ;;  %v902_v53 = vsel %vm901_vm2, %v898_v38, %v900_v52 }
 0x32e   : > { %905 = vst.msk [vmem:[#allocation4] sm:$0xff] %vm904_vm3, %v902_v53 }
 0x32f   : > { %v957_v54 = vpop.permute.xlu0 %956 }
 0x330   : > { %959 = vst.msk [vmem:[#allocation4 + $0x8] sm:$0xff] %vm904_vm3, %v957_v54 }
 0x335   : > { %v960_v56 = vld [vmem:[#allocation4] sm:$0xff] }
 0x337   : > { %v961_v57 = vld [vmem:[#allocation4 + $0x8] sm:$0xff] }
 0x339   : > { %v966_v55 = vpop.permute.xlu1 %965 }
 0x33a   : > { %v968_v58 = vadd.f32 %v966_v55, %v960_v56  ;;  %v969_v59 = vadd.f32 %v966_v55, %v961_v57 }
 0x33c   : > { %vm970_vm4 = vcmp.ge.f32.partialorder %v968_v58, 0.0  ;;  %vm971_vm5 = vcmp.ge.f32.partialorder %v969_v59, 0.0  ;;  %v972_v60 = vmul.f32 0.2, %v968_v58  ;;  %v973_v61 = vmul.f32 0.2, %v969_v59 }
 0x33e   : > { %v974_v62 = vsel %vm970_vm4, %v968_v58, %v972_v60  ;;  %v975_v63 = vsel %vm971_vm5, %v969_v59, %v973_v61 }
 0x33f   : > { %v976_v1 = vmul.f32 1.4142135, %v974_v62  ;;  %v977_v2 = vmul.f32 1.4142135, %v975_v63 }
 0x341   : > { %978 = vst [vmem:[%s186_s11] sm:$0xff] %v976_v1  ;;  %979 = vst [vmem:[%s186_s11 + $0x8] sm:$0xff] %v977_v2 }
 0x342   : > { %1252 = shalt.err (!%p1249_p10)
}
 0x343   : > { %s1253_s5 = scalar_lea.hbm %s1606_s22, 256  ;;  %s1257_s4 = scalar_lea.hbm %s1646_s3, 512 }
 0x344   : > { %p1254_p2 = scmp.ne.s32.totalorder %s1606_s22, %s1253_s5  ;;  %p1258_p7 = scmp.lt.s32.totalorder %s1606_s22, %s1646_s3 }
 0x345   : > { %p1259_p0 = scmp.lt.s32.totalorder %s1257_s4, %s1253_s5 }
 0x346   : > { %p1255_p4 = pnand %p1254_p2, %p1657_p12 }
 0x347   : > { %p1260_p6 = por %p1259_p0, %p1258_p7 }
 0x348   : > { %p1256_p9 = pneg %p1255_p4 }
 0x34a   : > { %p1261_p11 = pnand %p1260_p6, %p1256_p9 }
 0x34c   : > { %1264 = shalt.err (!%p1261_p11)
}
 0x34d   : > { %1128 = dma.vmem_to_hbm [thread:$0]  (%p1657_p12), %s996_s17, 256, %s1606_s22, %s981_s16  }
 0x34e PF: > { %s1007_s23 = sand.u32 1, %s1291_s12   ;;  %p1658_p13 = scmp.ne.s32.totalorder %s1652_s25, 0 }
 0x34f   : > { %p1659_p1 = scmp.ge.s32.totalorder %s1303_s15, 2  ;;  %s1008_s8 = scalar_lea.sflag [#allocation7], %s1007_s23 }
 0x351   : > { %p1135_p3 = pnand %p1659_p1, %p1658_p13 }
 0x353   : > { %p1136_p5 = pneg %p1135_p3 }
 0x355   : > { %1286 = dma.done.wait (%p1136_p5), %s1008_s8, 256  }
 0x356   : > { %1288 = vsyncadd (%p1136_p5), %s1008_s8, 4294967040  ;;  %p16_p8 = scmp.ge.s32.totalorder %s1389_s18, 4   ;;  %s1660_s12 = smov %s1295_s13 }
 0x357   : > { %s1661_s13 = smov %s1299_s14  ;;  %s1662_s14 = smov %s1401_s21 }
 0x358   : > { %s1663_s15 = smov %s1389_s18  ;;  %18 = sbr.rel (!%p16_p8) target bundleno = 5 (0x5), region = 77 }
 0x35d   :  { %1013 = vsyncpa [#allocation6], 1 }
 0x35e   :  { %1015 = vsyncpa [#allocation6 + $0x1], 1 }
 0x35f   :  { %1016 = vsyncpa [#allocation7], 1 }
 0x360   :  { %1018 = vsyncpa [#allocation7 + $0x1], 1 }

</bundles_post_ra>
